<compile_context>
chip_gen: v7x
topology: tpu7x:2x2x1
jax: 0.10.0
libtpu: 0.0.40
codegen_flags: <defaults>
</compile_context>

<pallas_src>
import functools

import jax
import jax.numpy as jnp
from jax import lax
from jax.experimental import pallas as pl
from jax.experimental.pallas import tpu as pltpu

P_FEATS = 16      # p  (bank-marketing feature count, synthetic)
HIDDEN = 32       # config['hidden_dim']
BATCH = 1024      # demo batch


def _mlp_kernel(x_ref, w1_ref, bw_ref, b2_ref, o_ref):
    # x_ref : (tile_b, P) f32   natural input layout (no wrapper transpose)
    # w1_ref: (D, P)      f32   l1 weight_mu
    # bw_ref: (D, 2)      f32   column 0 = b1, column 1 = w2
    # b2_ref: (1,)        f32   SMEM scalar
    # o_ref : (1, tile_b) f32   batch on the lane axis -> lane-dense store
    x_bf = x_ref[...].astype(jnp.bfloat16)
    w1_bf = w1_ref[...].astype(jnp.bfloat16)
    # Layer 1 on the MXU: contract the shared P axis of (D,P) and (tile_b,P),
    # producing (D, tile_b) — the x transpose is folded into the MXU pass.
    h = lax.dot_general(
        w1_bf, x_bf,
        dimension_numbers=(((1,), (1,)), ((), ())),
        preferred_element_type=jnp.float32)
    b1 = bw_ref[:, 0:1]                                   # (D, 1), static slice
    w2 = bw_ref[:, 1:2]                                   # (D, 1), static slice
    h = jnp.maximum(h + b1, 0.0)                          # ReLU, f32 VPU
    # Layer 2 (single output unit): VPU multiply + sublane reduce, no N=1 MXU pass.
    z = jnp.sum(h * w2, axis=0, keepdims=True) + b2_ref[0]   # (1, tile_b)
    z = jnp.clip(z, -30.0, 30.0)                          # keep exp finite for approx recip
    # sigmoid(z) = 1 / (1 + exp(-z)); exp + approximate reciprocal both on the EUP.
    o_ref[...] = pl.reciprocal(1.0 + jnp.exp(-z), approx=True)


def _pick_tile_b(batch):
    """One grid step per TensorCore for small batches, capped at 2048 rows/step."""
    n_tc = 1
    try:
        dev = jax.devices()[0]
        kind = (getattr(dev, "device_kind", "") or "").lower()
        n_tc = getattr(dev, "num_cores", None)
        if not n_tc:
            # 2 TensorCores per device on v7x / v5p / v4-style parts.
            n_tc = 2 if any(v in kind for v in ("v7", "v5p", "v4")) else 1
    except Exception:
        n_tc = 1
    per_core = -(-batch // n_tc)
    # Round up to a lane-dense multiple of 256; cap at 2048 rows per step.
    return int(min(2048, max(256, -(-per_core // 256) * 256)))


@functools.partial(jax.jit, static_argnames=("tile_b",))
def bayesian_network_forward(x, w1, b1, w2, b2, *, tile_b=None):
    """Fused forward of BayesianNetwork (sample=False / posterior-mean weights).

    x : (..., p)   any leading shape, flattened like x.view(-1, p)
    w1: (D, P)     l1 weight_mu (natural PyTorch layout)
    b1: (D, 1)     l1 bias_mu
    w2: (D, 1)     l2 weight_mu, transposed
    b2: (1,)       l2 bias_mu
    Returns (B, 1) float32 probabilities.
    """
    D, P = w1.shape
    x = x.reshape(-1, P).astype(jnp.float32)      # x.view(-1, p)
    B = x.shape[0]
    if tile_b is None:
        tile_b = _pick_tile_b(B)
    b_pad = -(-B // tile_b) * tile_b
    if b_pad != B:
        x = jnp.pad(x, ((0, b_pad - B), (0, 0)))

    # Pack the two (D,1) parameter columns into one operand; b2 rides in SMEM.
    bw = jnp.concatenate(
        [b1.reshape(D, 1), w2.reshape(D, 1)], axis=1).astype(jnp.float32)
    b2 = b2.reshape(1).astype(jnp.float32)
    w1 = w1.astype(jnp.float32)

    grid = (b_pad // tile_b,)
    y_t = pl.pallas_call(
        _mlp_kernel,
        out_shape=jax.ShapeDtypeStruct((1, b_pad), jnp.float32),
        grid_spec=pltpu.PrefetchScalarGridSpec(
            num_scalar_prefetch=0,
            grid=grid,
            in_specs=[
                pl.BlockSpec((tile_b, P), lambda i: (i, 0)),        # x (natural layout)
                pl.BlockSpec((D, P), lambda i: (0, 0)),             # W1 (full)
                pl.BlockSpec((D, 2), lambda i: (0, 0)),             # [b1 | w2] packed
                pl.BlockSpec(memory_space=pltpu.MemorySpace.SMEM),  # b2 scalar
            ],
            out_specs=pl.BlockSpec((1, tile_b), lambda i: (0, i)),  # lane-dense out
        ),
        compiler_params=pltpu.CompilerParams(
            dimension_semantics=("parallel",)),
    )(x, w1, bw, b2)

    # Keep the module's (B, 1) contract; metadata-only when B is tile-aligned.
    if b_pad == B:
        return y_t.reshape(B, 1)
    return y_t[0, :B].reshape(B, 1)


def init_params(key):
    """Deterministic synthetic 'posterior mean' parameters (PyTorch layouts)."""
    k1, k2, k3, k4 = jax.random.split(key, 4)
    lim1 = 1.0 / jnp.sqrt(P_FEATS)
    lim2 = 1.0 / jnp.sqrt(HIDDEN)
    w1 = jax.random.uniform(k1, (HIDDEN, P_FEATS), jnp.float32, -lim1, lim1)  # l1 weight_mu
    b1 = jax.random.uniform(k2, (HIDDEN, 1), jnp.float32, -lim1, lim1)        # l1 bias_mu
    w2 = jax.random.uniform(k3, (HIDDEN, 1), jnp.float32, -lim2, lim2)        # l2 weight_mu^T
    b2 = jax.random.uniform(k4, (1,), jnp.float32, -lim2, lim2)               # l2 bias_mu
    return w1, b1, w2, b2


# TODO(synk): the stochastic path (sample=True, normalizing-flow weight sampling),
# kl()/BCELoss, and Monte-Carlo batching of sampled weight sets (extra 'parallel'
# sample grid axis) are training-time constructs not implemented here; only the
# deterministic (mean-weight) forward is provided.

if __name__ == "__main__":
    key = jax.random.PRNGKey(0)
    kx, kp = jax.random.split(key)
    x = jax.random.normal(kx, (BATCH, P_FEATS), jnp.float32)
    w1, b1, w2, b2 = init_params(kp)

    y = bayesian_network_forward(x, w1, b1, w2, b2)
    y = jax.block_until_ready(y)

    # Plain-JAX reference matching the kernel's bf16 MXU operands.
    xb = x.astype(jnp.bfloat16).astype(jnp.float32)
    w1f = w1.astype(jnp.bfloat16).astype(jnp.float32)
    h_ref = jnp.maximum(xb @ w1f.T + b1.reshape(1, -1), 0.0)
    ref = jax.nn.sigmoid(h_ref @ w2 + b2.reshape(1, 1))

    assert y.shape == (BATCH, 1)
    assert jnp.allclose(y, ref, atol=1e-2), float(jnp.max(jnp.abs(y - ref)))

    print("KERNEL_OK")
</pallas_src>

<mosaic_0001>
module attributes {stable_mosaic.version = 11 : i64} {
  func.func @_mlp_kernel(%arg0: i32, %arg1: memref<1024x16xf32, #tpu.memory_space<vmem>>, %arg2: memref<32x16xf32, #tpu.memory_space<vmem>>, %arg3: memref<32x2xf32, #tpu.memory_space<vmem>>, %arg4: memref<1xf32, #tpu.memory_space<smem>>, %arg5: memref<1x1024xf32, #tpu.memory_space<vmem>>) attributes {dimension_semantics = [#tpu.dimension_semantics<parallel>], iteration_bounds = array<i64: 1>, scalar_prefetch = 0 : i64, scratch_operands = 0 : i64, tpu.core_type = #tpu.core_type<tc>, window_params = [{transform_indices = @transform_0, window_bounds = array<i64: 1024, 16>}, {pipeline_mode = #tpu.pipeline_mode<synchronous>, transform_indices = @transform_1, window_bounds = array<i64: 32, 16>}, {pipeline_mode = #tpu.pipeline_mode<synchronous>, transform_indices = @transform_2, window_bounds = array<i64: 32, 2>}, {transform_indices = @transform_3, window_bounds = array<i64: 1>}, {transform_indices = @transform_4, window_bounds = array<i64: 1, 1024>}]} {
    %c0 = arith.constant 0 : index
    %c0_0 = arith.constant 0 : index
    %0 = vector.load %arg1[%c0, %c0_0] : memref<1024x16xf32, #tpu.memory_space<vmem>>, vector<1024x16xf32>
    %1 = arith.truncf %0 : vector<1024x16xf32> to vector<1024x16xbf16>
    %c0_1 = arith.constant 0 : index
    %c0_2 = arith.constant 0 : index
    %2 = vector.load %arg2[%c0_1, %c0_2] : memref<32x16xf32, #tpu.memory_space<vmem>>, vector<32x16xf32>
    %3 = arith.truncf %2 : vector<32x16xf32> to vector<32x16xbf16>
    %cst = arith.constant dense<0.000000e+00> : vector<32x1024xf32>
    %4 = tpu.matmul %3, %1, %cst {dimension_numbers = #tpu.dot_dimension_numbers<[1], [1], [0], [0], [0, 0, 1, 0], [], []>} : vector<32x16xbf16>, vector<1024x16xbf16>, vector<32x1024xf32> -> vector<32x1024xf32>
    %c0_3 = arith.constant 0 : index
    %c0_4 = arith.constant 0 : index
    %5 = vector.load %arg3[%c0_3, %c0_4] : memref<32x2xf32, #tpu.memory_space<vmem>>, vector<32x1xf32>
    %c0_5 = arith.constant 0 : index
    %c1 = arith.constant 1 : index
    %6 = vector.load %arg3[%c0_5, %c1] : memref<32x2xf32, #tpu.memory_space<vmem>>, vector<32x1xf32>
    %7 = vector.broadcast %5 : vector<32x1xf32> to vector<32x1024xf32>
    %8 = arith.addf %4, %7 : vector<32x1024xf32>
    %cst_6 = arith.constant 0.000000e+00 : f32
    %9 = vector.broadcast %cst_6 : f32 to vector<32x1024xf32>
    %10 = arith.maximumf %8, %9 : vector<32x1024xf32>
    %11 = vector.broadcast %6 : vector<32x1xf32> to vector<32x1024xf32>
    %12 = arith.mulf %10, %11 : vector<32x1024xf32>
    %cst_7 = arith.constant dense<0.000000e+00> : vector<1024xf32>
    %13 = vector.multi_reduction <add>, %12, %cst_7 [0] : vector<32x1024xf32> to vector<1024xf32>
    %14 = vector.shape_cast %13 : vector<1024xf32> to vector<1x1024xf32>
    %c0_8 = arith.constant 0 : index
    %15 = memref.load %arg4[%c0_8] : memref<1xf32, #tpu.memory_space<smem>>
    %16 = vector.broadcast %15 : f32 to vector<1x1024xf32>
    %17 = arith.addf %14, %16 : vector<1x1024xf32>
    %cst_9 = arith.constant -3.000000e+01 : f32
    %cst_10 = arith.constant 3.000000e+01 : f32
    %18 = vector.broadcast %cst_9 : f32 to vector<1x1024xf32>
    %19 = arith.maximumf %18, %17 : vector<1x1024xf32>
    %20 = vector.broadcast %cst_10 : f32 to vector<1x1024xf32>
    %21 = arith.minimumf %20, %19 : vector<1x1024xf32>
    %cst_11 = arith.constant 0.000000e+00 : f32
    %22 = vector.broadcast %cst_11 : f32 to vector<1x1024xf32>
    %23 = arith.subf %22, %21 : vector<1x1024xf32>
    %24 = math.exp %23 : vector<1x1024xf32>
    %cst_12 = arith.constant 1.000000e+00 : f32
    %25 = vector.broadcast %cst_12 : f32 to vector<1x1024xf32>
    %26 = arith.addf %25, %24 : vector<1x1024xf32>
    %27 = tpu.reciprocal %26 {approx = true} : vector<1x1024xf32> -> vector<1x1024xf32>
    %c0_13 = arith.constant 0 : index
    %c0_14 = arith.constant 0 : index
    %28 = vector.load %arg5[%c0_13, %c0_14] : memref<1x1024xf32, #tpu.memory_space<vmem>>, vector<1x1024xf32>
    tpu.vector_store %arg5[%c0_13, %c0_14], %27 {strides = array<i32>} : memref<1x1024xf32, #tpu.memory_space<vmem>>, vector<1x1024xf32>,
    return
  }
  func.func @transform_0(%arg0: i32) -> (i32, i32) {
    %c0_i32 = arith.constant 0 : i32
    %c0_i32_0 = arith.constant 0 : i32
    return %arg0, %c0_i32 : i32, i32
  }
  func.func @transform_1(%arg0: i32) -> (i32, i32) {
    %c0_i32 = arith.constant 0 : i32
    %c0_i32_0 = arith.constant 0 : i32
    %c0_i32_1 = arith.constant 0 : i32
    return %c0_i32, %c0_i32_0 : i32, i32
  }
  func.func @transform_2(%arg0: i32) -> (i32, i32) {
    %c0_i32 = arith.constant 0 : i32
    %c0_i32_0 = arith.constant 0 : i32
    %c0_i32_1 = arith.constant 0 : i32
    return %c0_i32, %c0_i32_0 : i32, i32
  }
  func.func @transform_3(%arg0: i32) -> i32 {
    %c0_i32 = arith.constant 0 : i32
    %c0_i32_0 = arith.constant 0 : i32
    return %c0_i32 : i32
  }
  func.func @transform_4(%arg0: i32) -> (i32, i32) {
    %c0_i32 = arith.constant 0 : i32
    %c0_i32_0 = arith.constant 0 : i32
    return %c0_i32, %arg0 : i32, i32
  }
}

</mosaic_0001>

<bundles_post_ra>
// kernel: bayesian_network_forward.1
= control target key start
LH: loop header
LB: loop body
LE: loop exit
PB: predicated region body
PF: predicated region fallthrough
CT: control target
= control target key end

     0   :  { %vm242_vm0 = vcmask 130048   ;;  %v1136_v42 = vmov 0   ;;  %s1795_s0 = inlined_call_operand.vmem [shape: f32[1024,16], index: 0, kind: input, shape index: {}]   ;;  %s1796_s1 = inlined_call_operand.vmem [shape: f32[32,16], index: 1, kind: input, shape index: {}]   ;;  %s1797_s2 = inlined_call_operand.vmem [shape: f32[32,2], index: 2, kind: input, shape index: {}]   ;;  %s1798_s3 = inlined_call_operand.<no memory space> [shape: f32[1], index: 3, kind: input, shape index: {}]   ;;  %s1799_s4 = inlined_call_operand.hbm [shape: f32[1,1024], index: 4, kind: output, shape index: {}]  }
   0x1   :  { %v36_v0 = vld [vmem:[%s1795_s0 + $0x80] sm:$0xff]  ;;  %v37_v1 = vld [vmem:[%s1795_s0 + $0x88] sm:$0xff]  ;;  %v38_v11 = vld [vmem:[%s1795_s0 + $0x90] sm:$0xff]  ;;  %1076 = vset.pattern.permute.xlu0 %v1136_v42  ;;  %1077 = vset.pattern.permute.xlu1 %v1136_v42 }
   0x2   :  { %v68_v2 = vld [vmem:[%s1795_s0 + $0x180] sm:$0xff]  ;;  %v156_v3 = vpack.c.bf16 %v37_v1, %v36_v0  ;;  %v69_v4 = vld [vmem:[%s1795_s0 + $0x188] sm:$0xff]  ;;  %v39_v13 = vld [vmem:[%s1795_s0 + $0x98] sm:$0xff] }
   0x3   :  { %v20_v5 = vld [vmem:[%s1795_s0] sm:$0xff]  ;;  %v21_v6 = vld [vmem:[%s1795_s0 + $0x8] sm:$0xff]  ;;  %v172_v7 = vpack.c.bf16 %v69_v4, %v68_v2  ;;  %v70_v14 = vld [vmem:[%s1795_s0 + $0x190] sm:$0xff]  ;;  %v157_v17 = vpack.c.bf16 %v39_v13, %v38_v11 }
   0x4   :  { %v148_v8 = vpack.c.bf16 %v21_v6, %v20_v5  ;;  %v52_v9 = vld [vmem:[%s1795_s0 + $0x100] sm:$0xff]  ;;  %v53_v10 = vld [vmem:[%s1795_s0 + $0x108] sm:$0xff]  ;;  %1040 = vmatprep.subr.msk.bf16.mxu0 %vm242_vm0, %v156_v3  ;;  %v71_v15 = vld [vmem:[%s1795_s0 + $0x198] sm:$0xff] }
   0x5   :  { %v164_v12 = vpack.c.bf16 %v53_v10, %v52_v9  ;;  %1048 = vmatprep.subr.msk.bf16.mxu1 %vm242_vm0, %v172_v7  ;;  %v173_v18 = vpack.c.bf16 %v71_v15, %v70_v14  ;;  %v22_v19 = vld [vmem:[%s1795_s0 + $0x10] sm:$0xff]  ;;  %v23_v20 = vld [vmem:[%s1795_s0 + $0x18] sm:$0xff]  ;;  %v40_v26 = vld [vmem:[%s1795_s0 + $0xa0] sm:$0xff] }
   0x6   :  { %v250_v16 = vsel %vm242_vm0, %v148_v8, 0  ;;  %v54_v21 = vld [vmem:[%s1795_s0 + $0x110] sm:$0xff]  ;;  %v55_v23 = vld [vmem:[%s1795_s0 + $0x118] sm:$0xff]  ;;  %v149_v24 = vpack.c.bf16 %v23_v20, %v22_v19  ;;  %v41_v27 = vld [vmem:[%s1795_s0 + $0xa8] sm:$0xff] }
   0x7   :  { %961 = vmatpush3.bf16.xpose.msra.mxu0 %v250_v16  ;;  %v298_v22 = vsel %vm242_vm0, %v164_v12, 0  ;;  %v165_v25 = vpack.c.bf16 %v55_v23, %v54_v21  ;;  %v72_v28 = vld [vmem:[%s1795_s0 + $0x1a0] sm:$0xff]  ;;  %v73_v29 = vld [vmem:[%s1795_s0 + $0x1a8] sm:$0xff]  ;;  %v158_v31 = vpack.c.bf16 %v41_v27, %v40_v26  ;;  %v42_v40 = vld [vmem:[%s1795_s0 + $0xb0] sm:$0xff] }
   0x8   :  { %981 = vmatpush3.bf16.xpose.msra.mxu1 %v298_v22  ;;  %1041 = vmatprep.subr.msk.bf16.mxu0 %vm242_vm0, %v157_v17  ;;  %v253_v30 = vsel %vm242_vm0, %v149_v24, 0  ;;  %v174_v33 = vpack.c.bf16 %v73_v29, %v72_v28  ;;  %v24_v34 = vld [vmem:[%s1795_s0 + $0x20] sm:$0xff]  ;;  %v25_v35 = vld [vmem:[%s1795_s0 + $0x28] sm:$0xff]  ;;  %v43_v41 = vld [vmem:[%s1795_s0 + $0xb8] sm:$0xff] }
   0x9   :  { %1049 = vmatprep.subr.msk.bf16.mxu1 %vm242_vm0, %v173_v18  ;;  %v301_v32 = vsel %vm242_vm0, %v165_v25, 0  ;;  %v56_v36 = vld [vmem:[%s1795_s0 + $0x120] sm:$0xff]  ;;  %v57_v37 = vld [vmem:[%s1795_s0 + $0x128] sm:$0xff]  ;;  %v150_v38 = vpack.c.bf16 %v25_v35, %v24_v34  ;;  %v74_v43 = vld [vmem:[%s1795_s0 + $0x1b0] sm:$0xff]  ;;  %v159_v46 = vpack.c.bf16 %v43_v41, %v42_v40 }
   0xa   :  { %v166_v39 = vpack.c.bf16 %v57_v37, %v56_v36  ;;  %v75_v44 = vld [vmem:[%s1795_s0 + $0x1b8] sm:$0xff]  ;;  %v26_v49 = vld [vmem:[%s1795_s0 + $0x30] sm:$0xff]  ;;  %v212_v53 = vld [vmem:[%s1796_s1] sm:$0xff] }
   0xb   :  { %v256_v45 = vsel %vm242_vm0, %v150_v38, 0  ;;  %v175_v48 = vpack.c.bf16 %v75_v44, %v74_v43  ;;  %v27_v50 = vld [vmem:[%s1795_s0 + $0x38] sm:$0xff]  ;;  %v58_v51 = vld [vmem:[%s1795_s0 + $0x130] sm:$0xff]  ;;  %v213_v54 = vld [vmem:[%s1796_s1 + $0x8] sm:$0xff] }
   0xc   :  { %v304_v47 = vsel %vm242_vm0, %v166_v39, 0  ;;  %v59_v52 = vld [vmem:[%s1795_s0 + $0x138] sm:$0xff]  ;;  %v151_v55 = vpack.c.bf16 %v27_v50, %v26_v49  ;;  %v1280_v56 = vpack.c.bf16 %v213_v54, %v212_v53  ;;  %v44_v58 = vld [vmem:[%s1795_s0 + $0xc0] sm:$0xff]  ;;  %v45_v59 = vld [vmem:[%s1795_s0 + $0xc8] sm:$0xff] }
   0xd   :  { %v167_v57 = vpack.c.bf16 %v59_v52, %v58_v51  ;;  %v76_v60 = vld [vmem:[%s1795_s0 + $0x1c0] sm:$0xff]  ;;  %v77_v61 = vld [vmem:[%s1795_s0 + $0x1c8] sm:$0xff]  ;;  %v160_v63 = vpack.c.bf16 %v45_v59, %v44_v58  ;;  %v46_v8 = vld [vmem:[%s1795_s0 + $0xd0] sm:$0xff] }
   0xe   :  { %976 = vmatprep.mubr.msk.bf16.mxu0 %vm242_vm0, %v1280_v56  ;;  %996 = vmatprep.mubr.msk.bf16.mxu1 %vm242_vm0, %v1280_v56  ;;  %v259_v62 = vsel %vm242_vm0, %v151_v55, 0  ;;  %v176_v1 = vpack.c.bf16 %v77_v61, %v76_v60  ;;  %v28_v2 = vld [vmem:[%s1795_s0 + $0x40] sm:$0xff]  ;;  %v29_v3 = vld [vmem:[%s1795_s0 + $0x48] sm:$0xff]  ;;  %v47_v9 = vld [vmem:[%s1795_s0 + $0xd8] sm:$0xff] }
   0xf   :  { %963 = vmatpush3.bf16.xpose.msra.mxu0 %v253_v30  ;;  %v307_v0 = vsel %vm242_vm0, %v167_v57, 0  ;;  %v60_v4 = vld [vmem:[%s1795_s0 + $0x140] sm:$0xff]  ;;  %v61_v5 = vld [vmem:[%s1795_s0 + $0x148] sm:$0xff]  ;;  %v152_v6 = vpack.c.bf16 %v29_v3, %v28_v2  ;;  %v78_v10 = vld [vmem:[%s1795_s0 + $0x1d0] sm:$0xff]  ;;  %v161_v13 = vpack.c.bf16 %v47_v9, %v46_v8 }
  0x10   :  { %983 = vmatpush3.bf16.xpose.msra.mxu1 %v301_v32  ;;  %1042 = vmatprep.subr.msk.bf16.mxu0 %vm242_vm0, %v158_v31  ;;  %v168_v7 = vpack.c.bf16 %v61_v5, %v60_v4  ;;  %v79_v11 = vld [vmem:[%s1795_s0 + $0x1d8] sm:$0xff]  ;;  %v30_v16 = vld [vmem:[%s1795_s0 + $0x50] sm:$0xff]  ;;  %v48_v22 = vld [vmem:[%s1795_s0 + $0xe0] sm:$0xff] }
  0x11   :  { %1050 = vmatprep.subr.msk.bf16.mxu1 %vm242_vm0, %v174_v33  ;;  %v262_v12 = vsel %vm242_vm0, %v152_v6, 0  ;;  %v177_v15 = vpack.c.bf16 %v79_v11, %v78_v10  ;;  %v31_v17 = vld [vmem:[%s1795_s0 + $0x58] sm:$0xff]  ;;  %v62_v18 = vld [vmem:[%s1795_s0 + $0x150] sm:$0xff]  ;;  %v49_v23 = vld [vmem:[%s1795_s0 + $0xe8] sm:$0xff] }
  0x12   :  { %v310_v14 = vsel %vm242_vm0, %v168_v7, 0  ;;  %v63_v19 = vld [vmem:[%s1795_s0 + $0x158] sm:$0xff]  ;;  %v153_v20 = vpack.c.bf16 %v31_v17, %v30_v16  ;;  %v80_v24 = vld [vmem:[%s1795_s0 + $0x1e0] sm:$0xff]  ;;  %v81_v25 = vld [vmem:[%s1795_s0 + $0x1e8] sm:$0xff]  ;;  %v162_v27 = vpack.c.bf16 %v49_v23, %v48_v22 }
  0x13   :  { %v169_v21 = vpack.c.bf16 %v63_v19, %v62_v18  ;;  %v178_v29 = vpack.c.bf16 %v81_v25, %v80_v24  ;;  %v32_v30 = vld [vmem:[%s1795_s0 + $0x60] sm:$0xff]  ;;  %v33_v31 = vld [vmem:[%s1795_s0 + $0x68] sm:$0xff]  ;;  %v220_v35 = vld [vmem:[%s1797_s2 + $0x10] sm:$0xff] }
  0x14   :  { %v265_v26 = vsel %vm242_vm0, %v153_v20, 0  ;;  %v64_v32 = vld [vmem:[%s1795_s0 + $0x160] sm:$0xff]  ;;  %v65_v33 = vld [vmem:[%s1795_s0 + $0x168] sm:$0xff] }
  0x15   :  { %v313_v28 = vsel %vm242_vm0, %v169_v21, 0  ;;  %v218_v34 = vld [vmem:[%s1797_s2] sm:$0xff] }
  0x16   :  { %224 = vperm.xlu0 %1076, %v218_v34  }
  0x17   :  { %965 = vmatpush3.bf16.xpose.msra.mxu0 %v256_v45 }
  0x18   :  { %985 = vmatpush3.bf16.xpose.msra.mxu1 %v304_v47  ;;  %1043 = vmatprep.subr.msk.bf16.mxu0 %vm242_vm0, %v159_v46 }
  0x19   :  { %1051 = vmatprep.subr.msk.bf16.mxu1 %vm242_vm0, %v175_v48 }
  0x1f   :  { %967 = vmatpush3.bf16.xpose.msra.mxu0 %v259_v62 }
  0x20   :  { %987 = vmatpush3.bf16.xpose.msra.mxu1 %v307_v0  ;;  %1044 = vmatprep.subr.msk.bf16.mxu0 %vm242_vm0, %v160_v63 }
  0x21   :  { %1052 = vmatprep.subr.msk.bf16.mxu1 %vm242_vm0, %v176_v1 }
  0x27   :  { %969 = vmatpush3.bf16.xpose.msra.mxu0 %v262_v12 }
  0x28   :  { %989 = vmatpush3.bf16.xpose.msra.mxu1 %v310_v14  ;;  %1045 = vmatprep.subr.msk.bf16.mxu0 %vm242_vm0, %v161_v13 }
  0x29   :  { %1053 = vmatprep.subr.msk.bf16.mxu1 %vm242_vm0, %v177_v15 }
  0x2f   :  { %971 = vmatpush3.bf16.xpose.msra.mxu0 %v265_v26 }
  0x30   :  { %10 = vsyncpa [#allocation4], 0  ;;  %991 = vmatpush3.bf16.xpose.msra.mxu1 %v313_v28  ;;  %1046 = vmatprep.subr.msk.bf16.mxu0 %vm242_vm0, %v162_v27  ;;  %v154_v36 = vpack.c.bf16 %v33_v31, %v32_v30  ;;  %v219_v37 = vld [vmem:[%s1797_s2 + $0x8] sm:$0xff]  ;;  %v170_v38 = vpack.c.bf16 %v65_v33, %v64_v32  ;;  %v50_v39 = vld [vmem:[%s1795_s0 + $0xf0] sm:$0xff]  ;;  %v1137_v52 = vmov 1  }
  0x31   :  { %1054 = vmatprep.subr.msk.bf16.mxu1 %vm242_vm0, %v178_v29  ;;  %v51_v40 = vld [vmem:[%s1795_s0 + $0xf8] sm:$0xff]  ;;  %234 = vperm.xlu1 %1077, %v220_v35   ;;  %v82_v41 = vld [vmem:[%s1795_s0 + $0x1f0] sm:$0xff]  ;;  %v100_v55 = vld [vmem:[%s1795_s0 + $0x280] sm:$0xff] }
  0x32   :  { %v83_v42 = vld [vmem:[%s1795_s0 + $0x1f8] sm:$0xff]  ;;  %229 = vperm.xlu0 %1076, %v219_v37   ;;  %v268_v44 = vsel %vm242_vm0, %v154_v36, 0  ;;  %v163_v45 = vpack.c.bf16 %v51_v40, %v50_v39  ;;  %v316_v46 = vsel %vm242_vm0, %v170_v38, 0  ;;  %v34_v48 = vld [vmem:[%s1795_s0 + $0x70] sm:$0xff]  ;;  %v101_v57 = vld [vmem:[%s1795_s0 + $0x288] sm:$0xff] }
  0x33   :  { %v221_v43 = vld [vmem:[%s1797_s2 + $0x18] sm:$0xff]  ;;  %v179_v47 = vpack.c.bf16 %v83_v42, %v82_v41  ;;  %v66_v50 = vld [vmem:[%s1795_s0 + $0x170] sm:$0xff]  ;;  %v132_v58 = vld [vmem:[%s1795_s0 + $0x380] sm:$0xff]  ;;  %v188_v61 = vpack.c.bf16 %v101_v57, %v100_v55 }
  0x34   :  { %v35_v49 = vld [vmem:[%s1795_s0 + $0x78] sm:$0xff]  ;;  %v133_v59 = vld [vmem:[%s1795_s0 + $0x388] sm:$0xff]  ;;  %v84_v0 = vld [vmem:[%s1795_s0 + $0x200] sm:$0xff] }
  0x35   :  { %239 = vperm.xlu1 %1077, %v221_v43   ;;  %v67_v51 = vld [vmem:[%s1795_s0 + $0x178] sm:$0xff]  ;;  %v155_v53 = vpack.c.bf16 %v35_v49, %v34_v48  ;;  %v204_v63 = vpack.c.bf16 %v133_v59, %v132_v58  ;;  %v85_v1 = vld [vmem:[%s1795_s0 + $0x208] sm:$0xff]  ;;  %v116_v2 = vld [vmem:[%s1795_s0 + $0x300] sm:$0xff] }
  0x36   :  { %1078 = vset.pattern.permute.xlu0 %v1137_v52  ;;  %v171_v54 = vpack.c.bf16 %v67_v51, %v66_v50  ;;  %v117_v3 = vld [vmem:[%s1795_s0 + $0x308] sm:$0xff]  ;;  %v180_v4 = vpack.c.bf16 %v85_v1, %v84_v0  ;;  %v214_v6 = vld [vmem:[%s1796_s1 + $0x10] sm:$0xff]  ;;  %v215_v7 = vld [vmem:[%s1796_s1 + $0x18] sm:$0xff] }
  0x37   :  { %973 = vmatpush3.bf16.xpose.msra.mxu0 %v268_v44  ;;  %686 = vperm.xlu0 %1078, %v218_v34   ;;  %v271_v60 = vsel %vm242_vm0, %v155_v53, 0  ;;  %v196_v5 = vpack.c.bf16 %v117_v3, %v116_v2  ;;  %v102_v8 = vld [vmem:[%s1795_s0 + $0x290] sm:$0xff]  ;;  %v103_v9 = vld [vmem:[%s1795_s0 + $0x298] sm:$0xff]  ;;  %v1458_v13 = vpack.c.bf16 %v215_v7, %v214_v6  ;;  %v104_v23 = vld [vmem:[%s1795_s0 + $0x2a0] sm:$0xff] }
  0x38   :  { %993 = vmatpush3.bf16.xpose.msra.mxu1 %v316_v46  ;;  %1047 = vmatprep.subr.msk.bf16.mxu0 %vm242_vm0, %v163_v45  ;;  %v319_v62 = vsel %vm242_vm0, %v171_v54, 0  ;;  %v134_v10 = vld [vmem:[%s1795_s0 + $0x390] sm:$0xff]  ;;  %v135_v11 = vld [vmem:[%s1795_s0 + $0x398] sm:$0xff]  ;;  %v346_v12 = vsel %vm242_vm0, %v180_v4, 0  ;;  %v189_v15 = vpack.c.bf16 %v103_v9, %v102_v8  ;;  %v105_v24 = vld [vmem:[%s1795_s0 + $0x2a8] sm:$0xff] }
  0x39   :  { %1055 = vmatprep.subr.msk.bf16.mxu1 %vm242_vm0, %v179_v47  ;;  %1079 = vset.pattern.permute.xlu1 %v1137_v52  ;;  %v394_v14 = vsel %vm242_vm0, %v196_v5, 0  ;;  %v86_v16 = vld [vmem:[%s1795_s0 + $0x210] sm:$0xff]  ;;  %v87_v17 = vld [vmem:[%s1795_s0 + $0x218] sm:$0xff]  ;;  %v205_v18 = vpack.c.bf16 %v135_v11, %v134_v10  ;;  %v136_v25 = vld [vmem:[%s1795_s0 + $0x3a0] sm:$0xff]  ;;  %v190_v28 = vpack.c.bf16 %v105_v24, %v104_v23 }
  0x3a   :  { %690 = vperm.xlu1 %1079, %v219_v37   ;;  %v118_v19 = vld [vmem:[%s1795_s0 + $0x310] sm:$0xff]  ;;  %v119_v20 = vld [vmem:[%s1795_s0 + $0x318] sm:$0xff]  ;;  %v181_v21 = vpack.c.bf16 %v87_v17, %v86_v16  ;;  %v137_v26 = vld [vmem:[%s1795_s0 + $0x3a8] sm:$0xff] }
  0x3b   :  { %698 = vperm.xlu0 %1078, %v221_v43   ;;  %v197_v22 = vpack.c.bf16 %v119_v20, %v118_v19  ;;  %v206_v30 = vpack.c.bf16 %v137_v26, %v136_v25  ;;  %v88_v31 = vld [vmem:[%s1795_s0 + $0x220] sm:$0xff]  ;;  %v89_v32 = vld [vmem:[%s1795_s0 + $0x228] sm:$0xff]  ;;  %v106_v37 = vld [vmem:[%s1795_s0 + $0x2b0] sm:$0xff] }
  0x3c   :  { %v349_v27 = vsel %vm242_vm0, %v181_v21, 0  ;;  %v120_v33 = vld [vmem:[%s1795_s0 + $0x320] sm:$0xff]  ;;  %v121_v34 = vld [vmem:[%s1795_s0 + $0x328] sm:$0xff]  ;;  %v107_v38 = vld [vmem:[%s1795_s0 + $0x2b8] sm:$0xff] }
  0x3d   :  { %v397_v29 = vsel %vm242_vm0, %v197_v22, 0  ;;  %v198_v36 = vpack.c.bf16 %v121_v34, %v120_v33  ;;  %v138_v39 = vld [vmem:[%s1795_s0 + $0x3b0] sm:$0xff]  ;;  %v139_v40 = vld [vmem:[%s1795_s0 + $0x3b8] sm:$0xff]  ;;  %v191_v42 = vpack.c.bf16 %v107_v38, %v106_v37  ;;  %v108_v51 = vld [vmem:[%s1795_s0 + $0x2c0] sm:$0xff] }
  0x3e   :  { %694 = vperm.xlu1 %1079, %v220_v35   ;;  %v182_v35 = vpack.c.bf16 %v89_v32, %v88_v31  ;;  %v207_v44 = vpack.c.bf16 %v139_v40, %v138_v39  ;;  %v90_v45 = vld [vmem:[%s1795_s0 + $0x230] sm:$0xff]  ;;  %v91_v46 = vld [vmem:[%s1795_s0 + $0x238] sm:$0xff]  ;;  %v109_v52 = vld [vmem:[%s1795_s0 + $0x2c8] sm:$0xff] }
  0x3f   :  { %975 = vmatpush3.bf16.xpose.msra.mxu0 %v271_v60  ;;  %v400_v43 = vsel %vm242_vm0, %v198_v36, 0  ;;  %v122_v47 = vld [vmem:[%s1795_s0 + $0x330] sm:$0xff]  ;;  %v123_v48 = vld [vmem:[%s1795_s0 + $0x338] sm:$0xff]  ;;  %v183_v49 = vpack.c.bf16 %v91_v46, %v90_v45  ;;  %v140_v53 = vld [vmem:[%s1795_s0 + $0x3c0] sm:$0xff]  ;;  %v192_v57 = vpack.c.bf16 %v109_v52, %v108_v51 }
  0x40   :  { %995 = vmatpush3.bf16.xpose.msra.mxu1 %v319_v62  ;;  %1056 = vmatprep.subr.msk.bf16.mxu0 %vm242_vm0, %v188_v61  ;;  %v352_v41 = vsel %vm242_vm0, %v182_v35, 0  ;;  %v199_v50 = vpack.c.bf16 %v123_v48, %v122_v47  ;;  %v141_v54 = vld [vmem:[%s1795_s0 + $0x3c8] sm:$0xff]  ;;  %v92_v60 = vld [vmem:[%s1795_s0 + $0x240] sm:$0xff]  ;;  %v110_v2 = vld [vmem:[%s1795_s0 + $0x2d0] sm:$0xff] }
  0x41   :  { %1064 = vmatprep.subr.msk.bf16.mxu1 %vm242_vm0, %v204_v63  ;;  %v355_v55 = vsel %vm242_vm0, %v183_v49, 0  ;;  %v208_v59 = vpack.c.bf16 %v141_v54, %v140_v53  ;;  %v93_v61 = vld [vmem:[%s1795_s0 + $0x248] sm:$0xff]  ;;  %v124_v62 = vld [vmem:[%s1795_s0 + $0x340] sm:$0xff]  ;;  %v111_v3 = vld [vmem:[%s1795_s0 + $0x2d8] sm:$0xff] }
  0x42   :  { %v403_v58 = vsel %vm242_vm0, %v199_v50, 0  ;;  %v125_v63 = vld [vmem:[%s1795_s0 + $0x348] sm:$0xff]  ;;  %v184_v0 = vpack.c.bf16 %v93_v61, %v92_v60  ;;  %v142_v4 = vld [vmem:[%s1795_s0 + $0x3d0] sm:$0xff]  ;;  %v143_v5 = vld [vmem:[%s1795_s0 + $0x3d8] sm:$0xff]  ;;  %v193_v7 = vpack.c.bf16 %v111_v3, %v110_v2 }
  0x43   :  { %v200_v1 = vpack.c.bf16 %v125_v63, %v124_v62  ;;  %v209_v9 = vpack.c.bf16 %v143_v5, %v142_v4  ;;  %v94_v10 = vld [vmem:[%s1795_s0 + $0x250] sm:$0xff]  ;;  %v95_v11 = vld [vmem:[%s1795_s0 + $0x258] sm:$0xff]  ;;  %v112_v17 = vld [vmem:[%s1795_s0 + $0x2e0] sm:$0xff] }
  0x44   :  { %v358_v6 = vsel %vm242_vm0, %v184_v0, 0  ;;  %v144_v19 = vld [vmem:[%s1795_s0 + $0x3e0] sm:$0xff]  ;;  %v145_v20 = vld [vmem:[%s1795_s0 + $0x3e8] sm:$0xff]  ;;  %v114_v31 = vld [vmem:[%s1795_s0 + $0x2f0] sm:$0xff] }
  0x45   :  { %v406_v8 = vsel %vm242_vm0, %v200_v1, 0  ;;  %v210_v24 = vpack.c.bf16 %v145_v20, %v144_v19  ;;  %v96_v25 = vld [vmem:[%s1795_s0 + $0x260] sm:$0xff]  ;;  %v97_v26 = vld [vmem:[%s1795_s0 + $0x268] sm:$0xff]  ;;  %v115_v32 = vld [vmem:[%s1795_s0 + $0x2f8] sm:$0xff] }
  0x46   :  { %977 = vmatmul.mubr.msk.bf16.vlgmr.msra.gmra.mrb[0].mxu0 %vm242_vm0, %v1280_v56  ;;  %v146_v33 = vld [vmem:[%s1795_s0 + $0x3f0] sm:$0xff]  ;;  %v147_v34 = vld [vmem:[%s1795_s0 + $0x3f8] sm:$0xff]  ;;  %v195_v36 = vpack.c.bf16 %v115_v32, %v114_v31 }
  0x47   :  { %997 = vmatmul.mubr.msk.bf16.vlgmr.msra.gmra.mrb[0].mxu1 %vm242_vm0, %v1280_v56  ;;  %1001 = vmatpush3.bf16.xpose.msra.mxu0 %v346_v12  ;;  %v126_v12 = vld [vmem:[%s1795_s0 + $0x350] sm:$0xff]  ;;  %v211_v38 = vpack.c.bf16 %v147_v34, %v146_v33  ;;  %v99_v40 = vld [vmem:[%s1795_s0 + $0x278] sm:$0xff] }
  0x48   :  { %1021 = vmatpush3.bf16.xpose.msra.mxu1 %v394_v14  ;;  %978 = vmatprep.mubr.msk.bf16.mxu0 %vm242_vm0, %v1458_v13  ;;  %v127_v14 = vld [vmem:[%s1795_s0 + $0x358] sm:$0xff]  ;;  %v98_v39 = vld [vmem:[%s1795_s0 + $0x270] sm:$0xff] }
  0x49   :  { %998 = vmatprep.mubr.msk.bf16.mxu1 %vm242_vm0, %v1458_v13  ;;  %1057 = vmatprep.subr.msk.bf16.mxu0 %vm242_vm0, %v189_v15  ;;  %v185_v15 = vpack.c.bf16 %v95_v11, %v94_v10  ;;  %v201_v16 = vpack.c.bf16 %v127_v14, %v126_v12 }
  0x4a   :  { %1065 = vmatprep.subr.msk.bf16.mxu1 %vm242_vm0, %v205_v18  ;;  %v113_v18 = vld [vmem:[%s1795_s0 + $0x2e8] sm:$0xff] }
  0x4b   :  { %v361_v21 = vsel %vm242_vm0, %v185_v15, 0  ;;  %v194_v22 = vpack.c.bf16 %v113_v18, %v112_v17  ;;  %v409_v23 = vsel %vm242_vm0, %v201_v16, 0 }
  0x4e   :  { %979 = vmatmul.mubr.msk.bf16.gmra.mrb[4].mxu0 %vm242_vm0, %v1458_v13 }
  0x4f   :  { %999 = vmatmul.mubr.msk.bf16.gmra.mrb[4].mxu1 %vm242_vm0, %v1458_v13  ;;  %1003 = vmatpush3.bf16.xpose.msra.mxu0 %v349_v27  ;;  %v128_v27 = vld [vmem:[%s1795_s0 + $0x360] sm:$0xff] }
  0x50   :  { %1023 = vmatpush3.bf16.xpose.msra.mxu1 %v397_v29  ;;  %1058 = vmatprep.subr.msk.bf16.mxu0 %vm242_vm0, %v190_v28  ;;  %v129_v28 = vld [vmem:[%s1795_s0 + $0x368] sm:$0xff]  ;;  %v186_v29 = vpack.c.bf16 %v97_v26, %v96_v25 }
  0x51   :  { %1066 = vmatprep.subr.msk.bf16.mxu1 %vm242_vm0, %v206_v30  ;;  %1016 = vmatprep.mubr.msk.bf16.mxu0 %vm242_vm0, %v1280_v56  ;;  %v202_v30 = vpack.c.bf16 %v129_v28, %v128_v27 }
  0x52   :  { %1036 = vmatprep.mubr.msk.bf16.mxu1 %vm242_vm0, %v1280_v56  ;;  %v364_v35 = vsel %vm242_vm0, %v186_v29, 0 }
  0x53   :  { %v412_v37 = vsel %vm242_vm0, %v202_v30, 0 }
  0x57   :  { %1005 = vmatpush3.bf16.xpose.msra.mxu0 %v352_v41  ;;  %v130_v41 = vld [vmem:[%s1795_s0 + $0x370] sm:$0xff] }
  0x58   :  { %1025 = vmatpush3.bf16.xpose.msra.mxu1 %v400_v43  ;;  %1059 = vmatprep.subr.msk.bf16.mxu0 %vm242_vm0, %v191_v42  ;;  %v131_v42 = vld [vmem:[%s1795_s0 + $0x378] sm:$0xff]  ;;  %v187_v43 = vpack.c.bf16 %v99_v40, %v98_v39 }
  0x59   :  { %1067 = vmatprep.subr.msk.bf16.mxu1 %vm242_vm0, %v207_v44  ;;  %v203_v44 = vpack.c.bf16 %v131_v42, %v130_v41 }
  0x5a   :  { %v367_v45 = vsel %vm242_vm0, %v187_v43, 0 }
  0x5b   :  { %v415_v46 = vsel %vm242_vm0, %v203_v44, 0 }
  0x5f   :  { %1007 = vmatpush3.bf16.xpose.msra.mxu0 %v355_v55 }
  0x60   :  { %1027 = vmatpush3.bf16.xpose.msra.mxu1 %v403_v58  ;;  %1060 = vmatprep.subr.msk.bf16.mxu0 %vm242_vm0, %v192_v57 }
  0x61   :  { %1068 = vmatprep.subr.msk.bf16.mxu1 %vm242_vm0, %v208_v59 }
  0x67   :  { %1009 = vmatpush3.bf16.xpose.msra.mxu0 %v358_v6 }
  0x68   :  { %1029 = vmatpush3.bf16.xpose.msra.mxu1 %v406_v8  ;;  %1061 = vmatprep.subr.msk.bf16.mxu0 %vm242_vm0, %v193_v7 }
  0x69   :  { %1069 = vmatprep.subr.msk.bf16.mxu1 %vm242_vm0, %v209_v9 }
  0x6f   :  { %1011 = vmatpush3.bf16.xpose.msra.mxu0 %v361_v21 }
  0x70   :  { %1031 = vmatpush3.bf16.xpose.msra.mxu1 %v409_v23  ;;  %1062 = vmatprep.subr.msk.bf16.mxu0 %vm242_vm0, %v194_v22 }
  0x71   :  { %1070 = vmatprep.subr.msk.bf16.mxu1 %vm242_vm0, %v210_v24 }
  0x77   :  { %1013 = vmatpush3.bf16.xpose.msra.mxu0 %v364_v35 }
  0x78   :  { %1033 = vmatpush3.bf16.xpose.msra.mxu1 %v412_v37  ;;  %1063 = vmatprep.subr.msk.bf16.mxu0 %vm242_vm0, %v195_v36 }
  0x79   :  { %1071 = vmatprep.subr.msk.bf16.mxu1 %vm242_vm0, %v211_v38 }
  0x7f   :  { %1015 = vmatpush3.bf16.xpose.msra.mxu0 %v367_v45 }
  0x80   :  { %1035 = vmatpush3.bf16.xpose.msra.mxu1 %v415_v46 }
  0x86   :  { %1017 = vmatmul.mubr.msk.bf16.vlgmr.msra.gmra.mrb[8].mxu0 %vm242_vm0, %v1280_v56 }
  0x87   :  { %1037 = vmatmul.mubr.msk.bf16.vlgmr.msra.gmra.mrb[8].mxu1 %vm242_vm0, %v1280_v56  ;;  %1018 = vmatprep.mubr.msk.bf16.mxu0 %vm242_vm0, %v1458_v13 }
  0x88   :  { %1038 = vmatprep.mubr.msk.bf16.mxu1 %vm242_vm0, %v1458_v13 }
  0x8e   :  { %1019 = vmatmul.mubr.msk.bf16.gmra.mrb[12].mxu0 %vm242_vm0, %v1458_v13 }
  0x8f   :  { %1039 = vmatmul.mubr.msk.bf16.gmra.mrb[12].mxu1 %vm242_vm0, %v1458_v13 }
  0x95   :  { %v1673_v47 = vpop.permute.xlu0 %224 }
  0xb0   :  { %v1675_v48 = vpop.permute.xlu1 %234 }
  0xb1   :  { %v1677_v49 = vpop.permute.xlu0 %229 }
  0xb4   :  { %v1679_v50 = vpop.permute.xlu1 %239 }
  0xb6   :  { %v1681_v51 = vpop.permute.xlu0 %686 }
  0xb9   :  { %v1690_v5 = vpop.permute.xlu1 %690 }
  0xba   :  { %v1710_v44 = vpop.permute.xlu0 %698 }
  0xbd   :  { %v1699_v20 = vpop.permute.xlu1 %694 }
 0x119   :  { %v475_v56 = vpop.f32.mrb[0].mxu0 }
 0x11a   :  { %v476_v52 = vadd.f32 %v475_v56, %v1673_v47  ;;  %v528_v53 = vpop.f32.mrb[0].mxu1  ;;  %v477_v54 = vpop.f32.mrb[1].mxu0 }
 0x11b   :  { %v529_v55 = vadd.f32 %v528_v53, %v1673_v47  ;;  %v478_v57 = vadd.f32 %v477_v54, %v1673_v47  ;;  %v530_v13 = vpop.f32.mrb[1].mxu1  ;;  %v479_v58 = vpop.f32.mrb[2].mxu0 }
 0x11c   :  { %v653_v59 = vmax.f32 %v476_v52, 0.0  ;;  %v531_v60 = vadd.f32 %v530_v13, %v1673_v47  ;;  %v480_v61 = vadd.f32 %v479_v58, %v1677_v49  ;;  %v532_v62 = vpop.f32.mrb[2].mxu1  ;;  %v481_v63 = vpop.f32.mrb[3].mxu0 }
 0x11d   :  { %v655_v0 = vmax.f32 %v529_v55, 0.0  ;;  %v654_v1 = vmax.f32 %v478_v57, 0.0  ;;  %v533_v2 = vadd.f32 %v532_v62, %v1677_v49  ;;  %v482_v3 = vadd.f32 %v481_v63, %v1677_v49  ;;  %v534_v4 = vpop.f32.mrb[3].mxu1 }
 0x11e   :  { %v656_v6 = vmax.f32 %v531_v60, 0.0  ;;  %v661_v7 = vmax.f32 %v480_v61, 0.0  ;;  %v535_v8 = vadd.f32 %v534_v4, %v1677_v49  ;;  %v701_v9 = vmul.f32 %v1681_v51, %v653_v59 }
 0x11f   :  { %v663_v10 = vmax.f32 %v533_v2, 0.0  ;;  %v662_v11 = vmax.f32 %v482_v3, 0.0  ;;  %v703_v12 = vmul.f32 %v1681_v51, %v655_v0  ;;  %v702_v16 = vmul.f32 %v1681_v51, %v654_v1 }
 0x120   :  { %v664_v14 = vmax.f32 %v535_v8, 0.0  ;;  %v709_v15 = vmul.f32 %v1690_v5, %v661_v7  ;;  %v704_v21 = vmul.f32 %v1681_v51, %v656_v6 }
 0x121   :  { %v710_v17 = vmul.f32 %v1690_v5, %v662_v11  ;;  %v711_v18 = vmul.f32 %v1690_v5, %v663_v10  ;;  %v485_v19 = vpop.f32.mrb[4].mxu0 }
 0x122   :  { %v712_v22 = vmul.f32 %v1690_v5, %v664_v14  ;;  %v486_v23 = vadd.f32 %v485_v19, %v1675_v48  ;;  %v538_v24 = vpop.f32.mrb[4].mxu1  ;;  %v487_v25 = vpop.f32.mrb[5].mxu0  ;;  %v733_v26 = vadd.f32 %v709_v15, %v701_v9 }
 0x123   :  { %v539_v27 = vadd.f32 %v538_v24, %v1675_v48  ;;  %v488_v28 = vadd.f32 %v487_v25, %v1675_v48  ;;  %v540_v29 = vpop.f32.mrb[5].mxu1  ;;  %v489_v30 = vpop.f32.mrb[6].mxu0  ;;  %v742_v31 = vadd.f32 %v710_v17, %v702_v16  ;;  %v751_v32 = vadd.f32 %v711_v18, %v703_v12 }
 0x124   :  { %v669_v33 = vmax.f32 %v486_v23, 0.0  ;;  %v541_v34 = vadd.f32 %v540_v29, %v1675_v48  ;;  %v490_v35 = vadd.f32 %v489_v30, %v1679_v50  ;;  %v542_v36 = vpop.f32.mrb[6].mxu1  ;;  %v491_v37 = vpop.f32.mrb[7].mxu0  ;;  %v760_v38 = vadd.f32 %v712_v22, %v704_v21 }
 0x125   :  { %v671_v39 = vmax.f32 %v539_v27, 0.0  ;;  %v670_v40 = vmax.f32 %v488_v28, 0.0  ;;  %v543_v41 = vadd.f32 %v542_v36, %v1679_v50  ;;  %v492_v42 = vadd.f32 %v491_v37, %v1679_v50  ;;  %v544_v43 = vpop.f32.mrb[7].mxu1 }
 0x126   :  { %v672_v45 = vmax.f32 %v541_v34, 0.0  ;;  %v677_v46 = vmax.f32 %v490_v35, 0.0  ;;  %v545_v56 = vadd.f32 %v544_v43, %v1679_v50  ;;  %v717_v52 = vmul.f32 %v1699_v20, %v669_v33 }
 0x127   :  { %v679_v53 = vmax.f32 %v543_v41, 0.0  ;;  %v678_v54 = vmax.f32 %v492_v42, 0.0  ;;  %v718_v55 = vmul.f32 %v1699_v20, %v670_v40  ;;  %v719_v57 = vmul.f32 %v1699_v20, %v671_v39 }
 0x128   :  { %v680_v13 = vmax.f32 %v545_v56, 0.0  ;;  %v720_v58 = vmul.f32 %v1699_v20, %v672_v45  ;;  %v734_v59 = vadd.f32 %v733_v26, %v717_v52  ;;  %v725_v60 = vmul.f32 %v1710_v44, %v677_v46 }
 0x129   :  { %v743_v61 = vadd.f32 %v742_v31, %v718_v55  ;;  %v752_v62 = vadd.f32 %v751_v32, %v719_v57  ;;  %v726_v63 = vmul.f32 %v1710_v44, %v678_v54  ;;  %v727_v0 = vmul.f32 %v1710_v44, %v679_v53 }
 0x12a   :  { %v761_v1 = vadd.f32 %v760_v38, %v720_v58  ;;  %v728_v2 = vmul.f32 %v1710_v44, %v680_v13  ;;  %v735_v3 = vadd.f32 %v734_v59, %v725_v60  ;;  %v1724_v27 = vstv %s1798_s3  ;;  %s1139_s3 = smov [#allocation3]  }
 0x12b   :  { %v744_v4 = vadd.f32 %v743_v61, %v726_v63  ;;  %v753_v6 = vadd.f32 %v752_v62, %v727_v0  ;;  %v1138_v0 = vmov 1966171168   ;;  %s936_s19 = sshll.u32 %s1139_s3, 4  ;;  %s937_s19 = int_to_ptr.vmem [resolvable:$true] %s936_s19 }
 0x12c   :  { %v736_v7 = vrot.slane %v735_v3, 4  ;;  %v762_v8 = vadd.f32 %v761_v1, %v728_v2  ;;  %v884_v1 = vunpack.c.l.s4 %v1138_v0  ;;  %v886_v2 = vlaneseq  ;;  %s1112_s20 = scalar_lea.vmem %s937_s19, 128  ;;  %p1117_p1 = scmp.lt.s32.totalorder %s937_s19, %s937_s19 }
 0x12d   :  { %v745_v9 = vrot.slane %v744_v4, 4  ;;  %v754_v10 = vrot.slane %v753_v6, 4  ;;  %p1113_p0 = scmp.ne.s32.totalorder %s937_s19, %s1112_s20  ;;  %p1118_p2 = scmp.lt.s32.totalorder %s1112_s20, %s1112_s20 }
 0x12e   :  { %v737_v11 = vadd.f32 %v736_v7, %v735_v3  ;;  %v763_v12 = vrot.slane %v762_v8, 4  ;;  %v885_v3 = vunpack.c.0.s8 %v884_v1 }
 0x12f   :  { %v746_v14 = vadd.f32 %v745_v9, %v744_v4  ;;  %v755_v15 = vadd.f32 %v754_v10, %v753_v6  ;;  %v887_v4 = vshrl.u32 %v886_v2, 7  ;;  %p1119_p3 = por %p1118_p2, %p1117_p1 }
 0x130   :  { %v738_v16 = vrot.slane %v737_v11, 2  ;;  %v764_v17 = vadd.f32 %v763_v12, %v762_v8 }
 0x131   :  { %v747_v18 = vrot.slane %v746_v14, 2  ;;  %v756_v19 = vrot.slane %v755_v15, 2  ;;  %p1120_p4 = pnand %p1119_p3, %p1113_p0 }
 0x132   :  { %v739_v21 = vadd.f32 %v738_v16, %v737_v11  ;;  %v765_v22 = vrot.slane %v764_v17, 2  ;;  %v1731_v16 = vsub.s32 %v885_v3, %v887_v4 }
 0x133   :  { %v748_v23 = vadd.f32 %v747_v18, %v746_v14  ;;  %v757_v24 = vadd.f32 %v756_v19, %v755_v15 }
 0x134   :  { %v740_v25 = vrot.slane %v739_v21, 1  ;;  %v766_v26 = vadd.f32 %v765_v22, %v764_v17 }
 0x135   :  { %v749_v28 = vrot.slane %v748_v23, 1  ;;  %v758_v29 = vrot.slane %v757_v24, 1 }
 0x136   :  { %v741_v30 = vadd.f32 %v740_v25, %v739_v21  ;;  %v767_v31 = vrot.slane %v766_v26, 1 }
 0x137   :  { %v750_v32 = vadd.f32 %v749_v28, %v748_v23  ;;  %v759_v33 = vadd.f32 %v758_v29, %v757_v24 }
 0x138   :  { %v768_v34 = vadd.f32 %v767_v31, %v766_v26  ;;  %v807_v35 = vadd.f32 %v1724_v27, %v741_v30 }
 0x139   :  { %v808_v36 = vadd.f32 %v1724_v27, %v750_v32  ;;  %v809_v37 = vadd.f32 %v1724_v27, %v759_v33 }
 0x13a   :  { %v810_v38 = vadd.f32 %v1724_v27, %v768_v34  ;;  %v952_v39 = vclamps-f32 %v807_v35, 30.0 }
 0x13b   :  { %v953_v40 = vclamps-f32 %v808_v36, 30.0  ;;  %v954_v41 = vclamps-f32 %v809_v37, 30.0 }
 0x13c   :  { %v955_v42 = vclamps-f32 %v810_v38, 30.0  ;;  %v831_v43 = vsub.f32 0.0, %v952_v39 }
 0x13d   :  { %v832_v45 = vsub.f32 0.0, %v953_v40  ;;  %v833_v46 = vsub.f32 0.0, %v954_v41 }
 0x13e   :  { %v834_v56 = vsub.f32 0.0, %v955_v42  ;;  %v839_v52 = vmul.f32 1.442695, %v831_v43 }
 0x13f   :  { %v841_v53 = vmul.f32 1.442695, %v832_v45  ;;  %v843_v54 = vmul.f32 1.442695, %v833_v46 }
 0x140   :  { %1080 = vpow2.f32 %v839_v52  ;;  %v845_v55 = vmul.f32 1.442695, %v834_v56 }
 0x141   :  { %1082 = vpow2.f32 %v841_v53 }
 0x142   :  { %1084 = vpow2.f32 %v843_v54 }
 0x143   :  { %1086 = vpow2.f32 %v845_v55 }
 0x14a   :  { %v1081_v57 = vpop.eup %1080 }
 0x14b   :  { %v1083_v13 = vpop.eup %1082  ;;  %v855_v58 = vadd.f32 1.0, %v1081_v57 }
 0x14c   :  { %v1085_v59 = vpop.eup %1084  ;;  %v856_v60 = vadd.f32 1.0, %v1083_v13 }
 0x14d   :  { %v1087_v61 = vpop.eup %1086  ;;  %v857_v62 = vadd.f32 1.0, %v1085_v59  ;;  %1088 = vrcp.f32 %v855_v58 }
 0x14e   :  { %v858_v63 = vadd.f32 1.0, %v1087_v61  ;;  %1090 = vrcp.f32 %v856_v60 }
 0x14f   :  { %1092 = vrcp.f32 %v857_v62 }
 0x150   :  { %1094 = vrcp.f32 %v858_v63 }
 0x157   :  { %v1089_v6 = vpop.eup %1088 }
 0x158   :  { %v1091_v7 = vpop.eup %1090 }
 0x159   :  { %v1093_v8 = vpop.eup %1092  ;;  %v581_v9 = vpop.f32.mrb[8].mxu0  ;;  %v879_v10 = vcombine.low %v1089_v6, %v1091_v7 }
 0x15a   :  { %v1095_v11 = vpop.eup %1094  ;;  %v582_v12 = vadd.f32 %v581_v9, %v1673_v47  ;;  %v634_v14 = vpop.f32.mrb[8].mxu1 }
 0x15b   :  { %v583_v15 = vpop.f32.mrb[9].mxu0  ;;  %v635_v17 = vadd.f32 %v634_v14, %v1673_v47  ;;  %v636_v19 = vpop.f32.mrb[9].mxu1  ;;  %v880_v22 = vcombine.low %v1093_v8, %v1095_v11  ;;  %v1741_v37 = vrot.slane %v879_v10, %v1731_v16 }
 0x15c   :  { %v584_v18 = vadd.f32 %v583_v15, %v1673_v47  ;;  %v585_v21 = vpop.f32.mrb[10].mxu0  ;;  %v657_v23 = vmax.f32 %v582_v12, 0.0  ;;  %v637_v24 = vadd.f32 %v636_v19, %v1673_v47  ;;  %v638_v26 = vpop.f32.mrb[10].mxu1 }
 0x15d   :  { %v586_v25 = vadd.f32 %v585_v21, %v1677_v49  ;;  %v587_v28 = vpop.f32.mrb[11].mxu0  ;;  %v659_v29 = vmax.f32 %v635_v17, 0.0  ;;  %v639_v31 = vadd.f32 %v638_v26, %v1677_v49  ;;  %v640_v33 = vpop.f32.mrb[11].mxu1  ;;  %v1747_v43 = vrot.slane %v880_v22, %v1731_v16 }
 0x15e   :  { %v658_v30 = vmax.f32 %v584_v18, 0.0  ;;  %v588_v32 = vadd.f32 %v587_v28, %v1677_v49  ;;  %v660_v34 = vmax.f32 %v637_v24, 0.0  ;;  %v641_v36 = vadd.f32 %v640_v33, %v1677_v49 }
 0x15f   :  { %v665_v35 = vmax.f32 %v586_v25, 0.0  ;;  %v705_v47 = vmul.f32 %v1681_v51, %v657_v23  ;;  %v667_v38 = vmax.f32 %v639_v31, 0.0  ;;  %v707_v40 = vmul.f32 %v1681_v51, %v659_v29 }
 0x160   :  { %v666_v39 = vmax.f32 %v588_v32, 0.0  ;;  %v668_v42 = vmax.f32 %v641_v36, 0.0  ;;  %v706_v45 = vmul.f32 %v1681_v51, %v658_v30  ;;  %v708_v46 = vmul.f32 %v1681_v51, %v660_v34 }
 0x161   :  { %v713_v41 = vmul.f32 %v1690_v5, %v665_v35  ;;  %v715_v49 = vmul.f32 %v1690_v5, %v667_v38  ;;  %v591_v52 = vpop.f32.mrb[12].mxu0  ;;  %v911_v58 = vcombine.low %v1741_v37, %v1747_v43 }
 0x162   :  { %v714_v56 = vmul.f32 %v1690_v5, %v666_v39  ;;  %v716_v54 = vmul.f32 %v1690_v5, %v668_v42  ;;  %v592_v55 = vadd.f32 %v591_v52, %v1675_v48  ;;  %v644_v57 = vpop.f32.mrb[12].mxu1  ;;  %v593_v13 = vpop.f32.mrb[13].mxu0 }
 0x163   :  { %v769_v53 = vadd.f32 %v713_v41, %v705_v47  ;;  %v787_v59 = vadd.f32 %v715_v49, %v707_v40  ;;  %v645_v61 = vadd.f32 %v644_v57, %v1675_v48  ;;  %v594_v51 = vadd.f32 %v593_v13, %v1675_v48  ;;  %v646_v62 = vpop.f32.mrb[13].mxu1  ;;  %v595_v63 = vpop.f32.mrb[14].mxu0 }
 0x164   :  { %v778_v60 = vadd.f32 %v714_v56, %v706_v45  ;;  %v796_v0 = vadd.f32 %v716_v54, %v708_v46  ;;  %v673_v1 = vmax.f32 %v592_v55, 0.0  ;;  %v647_v2 = vadd.f32 %v646_v62, %v1675_v48  ;;  %v648_v3 = vpop.f32.mrb[14].mxu1  ;;  %v597_v4 = vpop.f32.mrb[15].mxu0 }
 0x165   :  { %v596_v5 = vadd.f32 %v595_v63, %v1679_v50  ;;  %v675_v6 = vmax.f32 %v645_v61, 0.0  ;;  %v674_v7 = vmax.f32 %v594_v51, 0.0  ;;  %v649_v8 = vadd.f32 %v648_v3, %v1679_v50  ;;  %v650_v10 = vpop.f32.mrb[15].mxu1 }
 0x166   :  { %v598_v9 = vadd.f32 %v597_v4, %v1679_v50  ;;  %v721_v11 = vmul.f32 %v1699_v20, %v673_v1  ;;  %v676_v12 = vmax.f32 %v647_v2, 0.0  ;;  %v651_v15 = vadd.f32 %v650_v10, %v1679_v50 }
 0x167   :  { %v681_v14 = vmax.f32 %v596_v5, 0.0  ;;  %v723_v17 = vmul.f32 %v1699_v20, %v675_v6  ;;  %v722_v48 = vmul.f32 %v1699_v20, %v674_v7  ;;  %v683_v18 = vmax.f32 %v649_v8, 0.0 }
 0x168   :  { %v682_v19 = vmax.f32 %v598_v9, 0.0  ;;  %v770_v21 = vadd.f32 %v769_v53, %v721_v11  ;;  %v724_v22 = vmul.f32 %v1699_v20, %v676_v12  ;;  %v684_v24 = vmax.f32 %v651_v15, 0.0 }
 0x169   :  { %v729_v23 = vmul.f32 %v1710_v44, %v681_v14  ;;  %v788_v25 = vadd.f32 %v787_v59, %v723_v17  ;;  %v779_v26 = vadd.f32 %v778_v60, %v722_v48  ;;  %v731_v28 = vmul.f32 %v1710_v44, %v683_v18 }
 0x16a   :  { %v730_v29 = vmul.f32 %v1710_v44, %v682_v19  ;;  %v797_v30 = vadd.f32 %v796_v0, %v724_v22  ;;  %v732_v31 = vmul.f32 %v1710_v44, %v684_v24 }
 0x16b   :  { %v771_v50 = vadd.f32 %v770_v21, %v729_v23  ;;  %v789_v32 = vadd.f32 %v788_v25, %v731_v28 }
 0x16c   :  { %v780_v33 = vadd.f32 %v779_v26, %v730_v29  ;;  %v798_v35 = vadd.f32 %v797_v30, %v732_v31 }
 0x16d   :  { %v772_v34 = vrot.slane %v771_v50, 4  ;;  %v790_v36 = vrot.slane %v789_v32, 4 }
 0x16e   :  { %v781_v47 = vrot.slane %v780_v33, 4  ;;  %v799_v38 = vrot.slane %v798_v35, 4 }
 0x16f   :  { %v773_v20 = vadd.f32 %v772_v34, %v771_v50  ;;  %v791_v39 = vadd.f32 %v790_v36, %v789_v32  ;;  %v919_v32 = vrot.slane %v911_v58, %v1731_v16 }
 0x170   :  { %v782_v40 = vadd.f32 %v781_v47, %v780_v33  ;;  %v800_v42 = vadd.f32 %v799_v38, %v798_v35 }
 0x171   :  { %v774_v41 = vrot.slane %v773_v20, 2  ;;  %v792_v45 = vrot.slane %v791_v39, 2 }
 0x172   :  { %v783_v46 = vrot.slane %v782_v40, 2  ;;  %v801_v56 = vrot.slane %v800_v42, 2 }
 0x173   :  { %v775_v49 = vadd.f32 %v774_v41, %v773_v20  ;;  %v793_v52 = vadd.f32 %v792_v45, %v791_v39 }
 0x174   :  { %v784_v53 = vadd.f32 %v783_v46, %v782_v40  ;;  %v802_v44 = vadd.f32 %v801_v56, %v800_v42 }
 0x175   :  { %v776_v54 = vrot.slane %v775_v49, 1  ;;  %v794_v55 = vrot.slane %v793_v52, 1 }
 0x176   :  { %v785_v57 = vrot.slane %v784_v53, 1  ;;  %v803_v59 = vrot.slane %v802_v44, 1 }
 0x177   :  { %v777_v13 = vadd.f32 %v776_v54, %v775_v49  ;;  %v795_v60 = vadd.f32 %v794_v55, %v793_v52 }
 0x178   :  { %v786_v61 = vadd.f32 %v785_v57, %v784_v53  ;;  %v804_v62 = vadd.f32 %v803_v59, %v802_v44 }
 0x179   :  { %v811_v51 = vadd.f32 %v1724_v27, %v777_v13  ;;  %v813_v63 = vadd.f32 %v1724_v27, %v795_v60 }
 0x17a   :  { %v812_v0 = vadd.f32 %v1724_v27, %v786_v61  ;;  %v814_v2 = vadd.f32 %v1724_v27, %v804_v62 }
 0x17b   :  { %v956_v1 = vclamps-f32 %v811_v51, 30.0  ;;  %v958_v5 = vclamps-f32 %v813_v63, 30.0 }
 0x17c   :  { %v957_v3 = vclamps-f32 %v812_v0, 30.0  ;;  %v959_v6 = vclamps-f32 %v814_v2, 30.0 }
 0x17d   :  { %v835_v4 = vsub.f32 0.0, %v956_v1  ;;  %v837_v7 = vsub.f32 0.0, %v958_v5 }
 0x17e   :  { %v836_v8 = vsub.f32 0.0, %v957_v3  ;;  %v838_v10 = vsub.f32 0.0, %v959_v6 }
 0x17f   :  { %v847_v9 = vmul.f32 1.442695, %v835_v4  ;;  %v851_v11 = vmul.f32 1.442695, %v837_v7 }
 0x180   :  { %v849_v12 = vmul.f32 1.442695, %v836_v8  ;;  %v853_v14 = vmul.f32 1.442695, %v838_v10 }
 0x181   :  { %1096 = vpow2.f32 %v847_v9 }
 0x182   :  { %1098 = vpow2.f32 %v851_v11 }
 0x183   :  { %1100 = vpow2.f32 %v849_v12 }
 0x184   :  { %1102 = vpow2.f32 %v853_v14 }
 0x18b   :  { %v1097_v15 = vpop.eup %1096 }
 0x18c   :  { %v1099_v17 = vpop.eup %1098  ;;  %v859_v48 = vadd.f32 1.0, %v1097_v15 }
 0x18d   :  { %v1101_v18 = vpop.eup %1100  ;;  %v861_v27 = vadd.f32 1.0, %v1099_v17 }
 0x18e   :  { %v1103_v19 = vpop.eup %1102  ;;  %1104 = vrcp.f32 %v859_v48  ;;  %v860_v21 = vadd.f32 1.0, %v1101_v18 }
 0x18f   :  { %1106 = vrcp.f32 %v861_v27  ;;  %v862_v22 = vadd.f32 1.0, %v1103_v19 }
 0x190   :  { %1108 = vrcp.f32 %v860_v21 }
 0x191   :  { %1110 = vrcp.f32 %v862_v22 }
 0x198   :  { %v1105_v23 = vpop.eup %1104 }
 0x199   :  { %v1107_v24 = vpop.eup %1106 }
 0x19a   :  { %v1109_v25 = vpop.eup %1108 }
 0x19b   :  { %v1111_v26 = vpop.eup %1110  ;;  %v881_v28 = vcombine.low %v1105_v23, %v1109_v25 }
 0x19c   :  { %v882_v29 = vcombine.low %v1107_v24, %v1111_v26 }
 0x19d   :  { %v903_v30 = vrot.slane %v881_v28, %v1731_v16 }
 0x19e   :  { %v910_v50 = vrot.slane %v882_v29, %v1731_v16 }
 0x1a0   :  { %v912_v31 = vcombine.low %v903_v30, %v910_v50 }
 0x1a2   :  { %v926_v33 = vrot.slane %v912_v31, %v1731_v16 }
 0x1a4   :  { %v927_v34 = vcombine.low %v919_v32, %v926_v33 }
 0x1a6   :  { %929 = vst [vmem:[#allocation3] sm:$0xff] %v927_v34 }
 0x1a7   :  { %1123 = shalt.err (!%p1120_p4)
}
 0x1a8   :  { %s1124_s2 = scalar_lea.hbm %s1799_s4, 128 }
 0x1a9   :  { %p1125_p5 = scmp.ne.s32.totalorder %s1799_s4, %s1124_s2  ;;  %p1128_p6 = scmp.lt.u32.totalorder %s1124_s2, %s1799_s4 }
 0x1ab   :  { %p1130_p7 = pnand %p1128_p6, %p1125_p5 }
 0x1ad   :  { %1133 = shalt.err (!%p1130_p7)
}
 0x1ae   :  { %939 = dma.vmem_to_hbm [thread:$0]  %s937_s19, 128, %s1799_s4, [#allocation4]  }
 0x1af   :  { %1134 = dma.done.wait [#allocation4], 128  }
 0x1b0   :  { %1135 = vsyncadd [#allocation4], 4294967168 }
 0x1b1   :  { %943 = vsyncpa [#allocation4], 1 }

</bundles_post_ra>
